<compile_context>
chip_gen: v5e
topology: v5e:2x2
jax: 0.10.0
libtpu: 0.0.40
codegen_flags: <defaults>
</compile_context>

<pallas_src>
import jax
import jax.numpy as jnp
from jax.experimental import pallas as pl
from jax.experimental.pallas import tpu as pltpu


def _fisher_partial_kernel(feat_ref, label_ref, centers_ref, csq_ref, cls_ref,
                           out_ref):
    feat = feat_ref[...].astype(jnp.float32)           # (TB, D)  streamed tile
    labels = label_ref[...]                             # (TB, 1)  int32
    centers = centers_ref[...].astype(jnp.float32)      # (C, D)   resident
    csq = csq_ref[...]                                   # (1, C)   resident f32
    cls_ids = cls_ref[...]                                # (1, C)   resident int32

    # --- F.normalize along features: x * rsqrt(max(||x||^2, eps^2)) ---------
    sq = jnp.sum(feat * feat, axis=1, keepdims=True)     # (TB, 1)
    r = jax.lax.rsqrt(jnp.maximum(sq, 1e-24))             # (TB, 1)  EUP
    feat_n = feat * r                                      # (TB, D)
    # ||feat_n||^2 without a second (TB, D) pass; exactly 0 for zero-padded rows.
    fn_sq = sq * (r * r)                                    # (TB, 1)

    # --- Sw tile partial: ||f||^2 - 2<f, c_y> + ||c_y||^2 --------------------
    # Gather is a one-hot select on a D-contraction matmul (MXU); no (TB, D)
    # centers_pred / diff temporaries are materialized.
    one_hot = (labels == cls_ids).astype(jnp.float32)      # (TB, C)
    g = jax.lax.dot_general(
        feat_n, centers, (((1,), (1,)), ((), ())),
        preferred_element_type=jnp.float32,
        precision=jax.lax.Precision.HIGHEST)                # (TB, C)
    per_row = fn_sq + jnp.sum(one_hot * (csq - 2.0 * g), axis=1, keepdims=True)
    partial = jnp.sum(per_row, axis=0, keepdims=True)       # (1, 1)

    # Lane-dense partial-sum slab: each grid step owns its own output block,
    # so the batch axis is truly "parallel" (no resident accumulator).
    out_ref[...] = jnp.broadcast_to(partial.reshape(1, 1, 1), out_ref.shape)


def _round_up(x, m):
    return ((x + m - 1) // m) * m


def fisher_loss_noback(feat, y, centers, feature_mean, *, block_rows=None):
    """feat: (B, D), y: (B,) int, centers: (C, D), feature_mean: (1, D).
    Returns a scalar f32 loss."""
    B, D = feat.shape
    C, Dc = centers.shape
    if Dc != D:
        raise ValueError(
            "Center's dim: {0} should be equal to input feature's dim: {1}".format(Dc, D))

    # Batch tile from a VMEM byte budget (~4 MiB per feat buffer works on
    # every generation, including v7x's 64 MiB VMEM).  No hard row cap.
    if block_rows is None:
        feat_budget = 4 * 1024 * 1024
        block_rows = max(8, (feat_budget // (D * 4)) // 8 * 8)
    tb = min(block_rows, _round_up(B, 8))
    tb = max(8, (tb // 8) * 8)
    b_pad = _round_up(B, tb)
    num_blocks = b_pad // tb

    feat_p = feat
    labels = y.astype(jnp.int32)
    if b_pad != B:
        feat_p = jnp.pad(feat, ((0, b_pad - B), (0, 0)))
        # Pad labels with C (out of range) -> all-zero one-hot -> zero contribution.
        labels = jnp.pad(labels, (0, b_pad - B), constant_values=C)
    labels_2d = labels.reshape(b_pad, 1)

    # Hoisted once: per-class squared norms and the class-id row (both tiny,
    # resident), so the kernel does not regenerate an iota every grid step.
    centers_f32 = centers.astype(jnp.float32)
    fmean_f32 = feature_mean.astype(jnp.float32)
    centers_sq = jnp.sum(centers_f32 * centers_f32, axis=1)[None, :]   # (1, C)
    class_ids = jnp.arange(C, dtype=jnp.int32)[None, :]                 # (1, C)

    # Generation-safe VMEM limit derived from the actual (lane-padded) footprint.
    lane_d = max(_round_up(D, 128), 128)
    footprint = (2 * tb * lane_d * 4                    # feat, double-buffered
                 + 2 * tb * 128 * 4                     # labels
                 + 2 * _round_up(C, 8) * lane_d * 4     # centers
                 + 4 * 8 * 128 * 4                      # centers_sq + class_ids
                 + 2 * 8 * 128 * 4)                     # output slab
    vmem_limit = int(min(max(footprint + (8 << 20), 32 << 20), 48 << 20))

    cost = pl.CostEstimate(
        flops=2 * b_pad * C * D + 5 * b_pad * D + 4 * b_pad * C + 2 * C * D,
        transcendentals=b_pad,
        bytes_accessed=(b_pad * D * 4 + b_pad * 4 + C * D * 4 + 2 * C * 4
                        + num_blocks * 8 * 128 * 4),
    )

    partials = pl.pallas_call(
        _fisher_partial_kernel,
        out_shape=jax.ShapeDtypeStruct((num_blocks, 8, 128), jnp.float32),
        grid_spec=pltpu.PrefetchScalarGridSpec(
            num_scalar_prefetch=0,
            grid=(num_blocks,),
            in_specs=[
                pl.BlockSpec((tb, D), lambda i: (i, 0)),   # feat tile (streamed)
                pl.BlockSpec((tb, 1), lambda i: (i, 0)),   # labels tile
                pl.BlockSpec((C, D), lambda i: (0, 0)),    # centers (resident)
                pl.BlockSpec((1, C), lambda i: (0, 0)),    # per-class ||c||^2
                pl.BlockSpec((1, C), lambda i: (0, 0)),    # class ids
            ],
            out_specs=pl.BlockSpec((1, 8, 128), lambda i: (i, 0, 0)),
        ),
        compiler_params=pltpu.CompilerParams(
            dimension_semantics=("parallel",),
            vmem_limit_bytes=vmem_limit,
        ),
        cost_estimate=cost,
    )(feat_p, labels_2d, centers_f32, centers_sq, class_ids)

    # Final tiny reduction + Sb term (only depends on centers / feature_mean).
    sw = jnp.sum(partials[:, 0, 0]) / B
    cdiff = centers_f32 - fmean_f32
    sb = jnp.mean(jnp.sum(cdiff * cdiff, axis=1) * 0.1) * 10.0
    return sw - jnp.sqrt(sb)


def _reference(feat, y, centers, feature_mean):
    # Pure-JAX reference mirroring the PyTorch forward.
    norm = jnp.sqrt(jnp.sum(feat * feat, axis=1, keepdims=True))
    feat_n = feat / jnp.maximum(norm, 1e-12)
    centers_pred = centers[y]
    Sw = jnp.mean(jnp.sum((feat_n - centers_pred) ** 2, axis=1))
    Sb = jnp.mean(jnp.sum((centers - feature_mean) ** 2, axis=1) * 0.1) * 10.0
    return Sw - jnp.sqrt(Sb)


if __name__ == "__main__":
    key = jax.random.PRNGKey(0)
    C, D = 4, 32  # num_classes, feat_dim
    k1, k3, k4 = jax.random.split(key, 3)

    # Deterministic "parameters" (module __init__ uses randn of these shapes).
    centers = jax.random.normal(k3, (C, D), dtype=jnp.float32)
    feature_mean = jax.random.normal(k4, (1, D), dtype=jnp.float32)

    # Exercise: single tile, padded last tile, and multi-block parallel grid.
    for B, block_rows in ((8, None), (10, None), (40, 8)):
        kf, kl = jax.random.split(jax.random.fold_in(k1, B))
        feat = jax.random.normal(kf, (B, D), dtype=jnp.float32)
        y = jax.random.randint(kl, (B,), 0, C, dtype=jnp.int32)

        out = fisher_loss_noback(feat, y, centers, feature_mean,
                                 block_rows=block_rows)
        out = jax.block_until_ready(out)
        ref = _reference(feat, y, centers, feature_mean)
        if not jnp.allclose(out, ref, rtol=1e-5, atol=1e-5):
            raise AssertionError((B, float(out), float(ref)))

    print("KERNEL_OK")
</pallas_src>

<mosaic_0001>
module attributes {stable_mosaic.version = 11 : i64} {
  func.func @_fisher_partial_kernel(%arg0: i32, %arg1: memref<8x32xf32, #tpu.memory_space<vmem>>, %arg2: memref<8x1xi32, #tpu.memory_space<vmem>>, %arg3: memref<4x32xf32, #tpu.memory_space<vmem>>, %arg4: memref<1x4xf32, #tpu.memory_space<vmem>>, %arg5: memref<1x4xi32, #tpu.memory_space<vmem>>, %arg6: memref<1x8x128xf32, #tpu.memory_space<vmem>>) attributes {dimension_semantics = [#tpu.dimension_semantics<parallel>], iteration_bounds = array<i64: 1>, scalar_prefetch = 0 : i64, scratch_operands = 0 : i64, tpu.core_type = #tpu.core_type<tc>, window_params = [{transform_indices = @transform_0, window_bounds = array<i64: 8, 32>}, {transform_indices = @transform_1, window_bounds = array<i64: 8, 1>}, {pipeline_mode = #tpu.pipeline_mode<synchronous>, transform_indices = @transform_2, window_bounds = array<i64: 4, 32>}, {pipeline_mode = #tpu.pipeline_mode<synchronous>, transform_indices = @transform_3, window_bounds = array<i64: 1, 4>}, {pipeline_mode = #tpu.pipeline_mode<synchronous>, transform_indices = @transform_4, window_bounds = array<i64: 1, 4>}, {transform_indices = @transform_5, window_bounds = array<i64: 1, 8, 128>}]} {
    %c0 = arith.constant 0 : index
    %c0_0 = arith.constant 0 : index
    %0 = vector.load %arg1[%c0, %c0_0] : memref<8x32xf32, #tpu.memory_space<vmem>>, vector<8x32xf32>
    %c0_1 = arith.constant 0 : index
    %c0_2 = arith.constant 0 : index
    %1 = vector.load %arg2[%c0_1, %c0_2] : memref<8x1xi32, #tpu.memory_space<vmem>>, vector<8x1xi32>
    %c0_3 = arith.constant 0 : index
    %c0_4 = arith.constant 0 : index
    %2 = vector.load %arg3[%c0_3, %c0_4] : memref<4x32xf32, #tpu.memory_space<vmem>>, vector<4x32xf32>
    %c0_5 = arith.constant 0 : index
    %c0_6 = arith.constant 0 : index
    %3 = vector.load %arg4[%c0_5, %c0_6] : memref<1x4xf32, #tpu.memory_space<vmem>>, vector<1x4xf32>
    %c0_7 = arith.constant 0 : index
    %c0_8 = arith.constant 0 : index
    %4 = vector.load %arg5[%c0_7, %c0_8] : memref<1x4xi32, #tpu.memory_space<vmem>>, vector<1x4xi32>
    %5 = arith.mulf %0, %0 : vector<8x32xf32>
    %cst = arith.constant dense<0.000000e+00> : vector<8xf32>
    %6 = vector.multi_reduction <add>, %5, %cst [1] : vector<8x32xf32> to vector<8xf32>
    %7 = vector.shape_cast %6 : vector<8xf32> to vector<8x1xf32>
    %cst_9 = arith.constant 1.000000e-24 : f32
    %8 = vector.broadcast %cst_9 : f32 to vector<8x1xf32>
    %9 = arith.maximumf %7, %8 : vector<8x1xf32>
    %10 = math.rsqrt %9 : vector<8x1xf32>
    %11 = vector.broadcast %10 : vector<8x1xf32> to vector<8x32xf32>
    %12 = arith.mulf %0, %11 : vector<8x32xf32>
    %13 = arith.mulf %10, %10 : vector<8x1xf32>
    %14 = arith.mulf %7, %13 : vector<8x1xf32>
    %15 = vector.broadcast %1 : vector<8x1xi32> to vector<8x4xi32>
    %16 = vector.broadcast %4 : vector<1x4xi32> to vector<8x4xi32>
    %17 = arith.cmpi eq, %15, %16 : vector<8x4xi32>
    %18 = arith.extui %17 : vector<8x4xi1> to vector<8x4xi32>
    %19 = arith.sitofp %18 : vector<8x4xi32> to vector<8x4xf32>
    %cst_10 = arith.constant dense<0.000000e+00> : vector<8x4xf32>
    %20 = tpu.matmul %12, %2, %cst_10 {dimension_numbers = #tpu.dot_dimension_numbers<[1], [1], [0], [0], [0, 0, 1, 0], [], []>, precision = #tpu.contract_precision<fp32>} : vector<8x32xf32>, vector<4x32xf32>, vector<8x4xf32> -> vector<8x4xf32>
    %cst_11 = arith.constant 2.000000e+00 : f32
    %21 = vector.broadcast %cst_11 : f32 to vector<8x4xf32>
    %22 = arith.mulf %21, %20 : vector<8x4xf32>
    %23 = vector.broadcast %3 : vector<1x4xf32> to vector<8x4xf32>
    %24 = arith.subf %23, %22 : vector<8x4xf32>
    %25 = arith.mulf %19, %24 : vector<8x4xf32>
    %cst_12 = arith.constant dense<0.000000e+00> : vector<8xf32>
    %26 = vector.multi_reduction <add>, %25, %cst_12 [1] : vector<8x4xf32> to vector<8xf32>
    %27 = vector.shape_cast %26 : vector<8xf32> to vector<8x1xf32>
    %28 = arith.addf %14, %27 : vector<8x1xf32>
    %cst_13 = arith.constant dense<0.000000e+00> : vector<1xf32>
    %29 = vector.multi_reduction <add>, %28, %cst_13 [0] : vector<8x1xf32> to vector<1xf32>
    %30 = vector.shape_cast %29 : vector<1xf32> to vector<1x1xf32>
    %31 = vector.shape_cast %30 : vector<1x1xf32> to vector<1x1x1xf32>
    %32 = vector.shape_cast %31 : vector<1x1x1xf32> to vector<1x1x1xf32>
    %33 = vector.broadcast %32 : vector<1x1x1xf32> to vector<1x8x128xf32>
    %c0_14 = arith.constant 0 : index
    %c0_15 = arith.constant 0 : index
    %c0_16 = arith.constant 0 : index
    %34 = vector.load %arg6[%c0_14, %c0_15, %c0_16] : memref<1x8x128xf32, #tpu.memory_space<vmem>>, vector<1x8x128xf32>
    tpu.vector_store %arg6[%c0_14, %c0_15, %c0_16], %33 {strides = array<i32>} : memref<1x8x128xf32, #tpu.memory_space<vmem>>, vector<1x8x128xf32>,
    return
  }
  func.func @transform_0(%arg0: i32) -> (i32, i32) {
    %c0_i32 = arith.constant 0 : i32
    %c0_i32_0 = arith.constant 0 : i32
    return %arg0, %c0_i32 : i32, i32
  }
  func.func @transform_1(%arg0: i32) -> (i32, i32) {
    %c0_i32 = arith.constant 0 : i32
    %c0_i32_0 = arith.constant 0 : i32
    return %arg0, %c0_i32 : i32, i32
  }
  func.func @transform_2(%arg0: i32) -> (i32, i32) {
    %c0_i32 = arith.constant 0 : i32
    %c0_i32_0 = arith.constant 0 : i32
    %c0_i32_1 = arith.constant 0 : i32
    return %c0_i32, %c0_i32_0 : i32, i32
  }
  func.func @transform_3(%arg0: i32) -> (i32, i32) {
    %c0_i32 = arith.constant 0 : i32
    %c0_i32_0 = arith.constant 0 : i32
    %c0_i32_1 = arith.constant 0 : i32
    return %c0_i32, %c0_i32_0 : i32, i32
  }
  func.func @transform_4(%arg0: i32) -> (i32, i32) {
    %c0_i32 = arith.constant 0 : i32
    %c0_i32_0 = arith.constant 0 : i32
    %c0_i32_1 = arith.constant 0 : i32
    return %c0_i32, %c0_i32_0 : i32, i32
  }
  func.func @transform_5(%arg0: i32) -> (i32, i32, i32) {
    %c0_i32 = arith.constant 0 : i32
    %c0_i32_0 = arith.constant 0 : i32
    %c0_i32_1 = arith.constant 0 : i32
    return %arg0, %c0_i32, %c0_i32_0 : i32, i32, i32
  }
}

</mosaic_0001>

<bundles_post_ra>
// kernel: tpu_custom_call.1
= control target key start
LH: loop header
LB: loop body
LE: loop exit
PB: predicated region body
PF: predicated region fallthrough
CT: control target
= control target key end

     0   :  { %10 = vsyncpa [#allocation3], 0  ;;  %s370_s0 = inlined_call_operand.vmem [shape: f32[8,32], index: 0, kind: input, shape index: {}]   ;;  %s371_s1 = inlined_call_operand.vmem [shape: s32[8,1], index: 1, kind: input, shape index: {}]   ;;  %s372_s2 = inlined_call_operand.hbm [shape: f32[4,32], index: 2, kind: input, shape index: {}]   ;;  %s373_s3 = inlined_call_operand.vmem [shape: f32[1,4], index: 3, kind: input, shape index: {}]   ;;  %s374_s4 = inlined_call_operand.vmem [shape: s32[1,4], index: 4, kind: input, shape index: {}]   ;;  %s375_s5 = inlined_call_operand.hbm [shape: f32[1,8,128], index: 5, kind: output, shape index: {}]  }
   0x1   :  { %11 = vsyncpa [#allocation4], 0  ;;  %s21_s20 = sshll.u32 %s372_s2, 4  ;;  %s315_s21 = smov [#allocation2]   ;;  %s22_s20 = int_to_ptr.hbm [resolvable:$true] %s21_s20 }
   0x2   :  { %s23_s22 = sshll.u32 %s315_s21, 4  ;;  %s24_s22 = int_to_ptr.vmem [resolvable:$true] %s23_s22 }
   0x3   :  { %26 = dma.hbm_to_vmem [thread:$0]  %s22_s20, 64, %s24_s22, [#allocation3]  }
   0x4   :  { %311 = dma.done.wait [#allocation3], 64  }
   0x5   :  { %312 = vsyncadd [#allocation3], 4294967232  ;;  %v35_v0 = vld [vmem:[%s370_s0] sm:$0xff]  ;;  %vm41_vm0 = vcmask 261120   ;;  %v316_v15 = vmov 0   ;;  %v317_v43 = vmov 0.0  }
   0x6   :  { %v37_v1 = vld [vmem:[#allocation2] sm:$0xf]  ;;  %v40_v2 = vmul.f32 %v35_v0, %v35_v0  ;;  %258 = vset.pattern.permute.xlu0 %v316_v15  ;;  %vm224_vm5 = vcmask 31744   ;;  %s243_s30 = sshll.u32 %s375_s5, 4  ;;  %s244_s30 = int_to_ptr.hbm [resolvable:$true] %s243_s30 }
   0x7   :  { %v70_v3 = vsel %vm41_vm0, %v37_v1, 0  ;;  %v36_v14 = vld [vmem:[%s371_s1] sm:$0xff] }
   0x8   :  { %v87_v4 = vand.u32 4294901760, %v70_v3  ;;  %v42_v5 = vsel %vm41_vm0, %v40_v2, 0.0  ;;  %v259_v35 = vld [vmem:[%s374_s4] ss:$0 sm:$0xff]  ;;  %s318_s4 = smov [#allocation5]  }
   0x9   :  { %43 = vadd.xlane.f32.xlu0 %v42_v5  ;;  %v260_v41 = vld [vmem:[%s373_s3] ss:$0 sm:$0xff]  ;;  %s241_s28 = sshll.u32 %s318_s4, 4  ;;  %s242_s28 = int_to_ptr.vmem [resolvable:$true] %s241_s28 }
   0xa   :  { %164 = vmatpush.xpose.msra.mxu3 %v87_v4  ;;  %88 = vmatpush.xpose.msra.mxu0 %v87_v4  ;;  %v114_v6 = vsub.f32 %v70_v3, %v87_v4 }
   0xc   :  { %v115_v7 = vand.u32 4294901760, %v114_v6  ;;  %141 = vmatpush.xpose.msra.mxu2 %v114_v6 }
   0xe   :  { %v116_v8 = vsub.f32 %v114_v6, %v115_v7  ;;  %190 = vmatpush.xpose.msrb.mxu0 %v115_v7 }
  0x10   :  { %v117_v9 = vand.u32 4294901760, %v116_v8 }
  0x12   :  { %118 = vmatpush.xpose.msra.mxu1 %v117_v9 }
  0x16   :  { %212 = vmatpush.xpose.msrb.mxu1 %v87_v4 }
  0x1d   :  { %60 = vperm.xlu0 %258, %v36_v14  }
  0x7c   :  { %v44_v10 = vpop.xlane.xlu0 %43 }
  0x7d   :  { %v45_v11 = vmax.f32 %v44_v10, 1e-24 }
  0x7f   :  { %261 = vrsqrt.f32 %v45_v11  ;;  %vm52_vm2 = vweird.f32 %v45_v11 }
  0x85   :  { %v262_v12 = vpop.eup %261 }
  0x86   :  { %v47_v13 = vmul.f32 %v262_v12, %v45_v11  ;;  %vm53_vm1 = vweird.f32 %v262_v12 }
  0x87   :  { %vm54_vm3 = vmor %vm52_vm2, %vm53_vm1 }
  0x88   :  { %v48_v16 = vmul.f32 %v262_v12, %v47_v13 }
  0x8a   :  { %v49_v17 = vmul.f32 0.5, %v48_v16 }
  0x8c   :  { %v50_v18 = vsub.f32 1.5, %v49_v17 }
  0x8e   :  { %v51_v19 = vmul.f32 %v262_v12, %v50_v18 }
  0x8f   :  { %v61_v37 = vpop.permute.xlu0 %60 }
  0x90   :  { %v55_v20 = vsel %vm54_vm3, %v262_v12, %v51_v19  ;;  %vm63_vm4 = vcmp.eq.s32.totalorder %v61_v37, %v259_v35 }
  0x91   :  { %v56_v21 = vmul.f32 %v55_v20, %v35_v0  ;;  %v253_v44 = vsel %vm63_vm4, 1.0, %v317_v43  ;;  %v57_v48 = vmul.f32 %v55_v20, %v55_v20 }
  0x93   :  { %v67_v22 = vsel %vm41_vm0, %v56_v21, 0  ;;  %v58_v49 = vmul.f32 %v57_v48, %v44_v10 }
  0x94   :  { %v89_v23 = vand.u32 4294901760, %v67_v22 }
  0x96   :  { %120 = vmatmul.f32.vlgmr.msra.gmra.mxu1 %v89_v23  ;;  %v90_v24 = vsub.f32 %v67_v22, %v89_v23 }
  0x98   :  { %144 = vmatmul.f32.vlgmr.msra.gmra.mxu2 %v90_v24  ;;  %v91_v25 = vand.u32 4294901760, %v90_v24 }
  0x9a   :  { %168 = vmatmul.f32.vlgmr.msra.gmra.mxu3 %v91_v25  ;;  %v92_v26 = vsub.f32 %v90_v24, %v91_v25 }
  0x9c   :  { %v93_v27 = vand.u32 4294901760, %v92_v26 }
  0x9e   :  { %94 = vmatmul.f32.vlgmr.msra.gmra.mxu0 %v93_v27  ;;  %214 = vmatmul.f32.vlgmr.msrb.gmra.mxu1 %v89_v23 }
  0xa6   :  { %192 = vmatmul.f32.vlgmr.msrb.gmra.mxu0 %v89_v23 }
 0x113   :  { %v121_v28 = vpop.f32.mrf.mxu1 }
 0x11b   :  { %v95_v29 = vpop.f32.mrf.mxu0  ;;  %v145_v31 = vpop.f32.mrf.mxu2 }
 0x11c   :  { %v122_v30 = vadd.f32 %v121_v28, %v95_v29  ;;  %v215_v39 = vpop.f32.mrf.mxu1 }
 0x11d   :  { %v169_v33 = vpop.f32.mrf.mxu3 }
 0x11e   :  { %v146_v32 = vadd.f32 %v145_v31, %v122_v30 }
 0x120   :  { %v170_v34 = vadd.f32 %v169_v33, %v146_v32 }
 0x123   :  { %v193_v36 = vpop.f32.mrf.mxu0 }
 0x124   :  { %v194_v38 = vadd.f32 %v193_v36, %v170_v34 }
 0x126   :  { %v216_v40 = vadd.f32 %v215_v39, %v194_v38 }
 0x128   :  { %v218_v42 = vmul.f32 2.0, %v216_v40 }
 0x12a   :  { %v222_v45 = vsub.f32 %v260_v41, %v218_v42 }
 0x12c   :  { %v223_v46 = vmul.f32 %v253_v44, %v222_v45 }
 0x12e   :  { %v225_v47 = vsel %vm224_vm5, %v223_v46, 0.0 }
 0x12f   :  { %226 = vadd.xlane.f32.xlu1 %v225_v47 }
 0x1a2   :  { %v227_v50 = vpop.xlane.xlu1 %226 }
 0x1a3   :  { %v228_v51 = vadd.f32 %v227_v50, %v58_v49 }
 0x1a5   :  { %v229_v52 = vrot.slane %v228_v51, 4 }
 0x1a7   :  { %v230_v53 = vadd.f32 %v229_v52, %v228_v51 }
 0x1a9   :  { %v231_v54 = vrot.slane %v230_v53, 2 }
 0x1ab   :  { %v232_v55 = vadd.f32 %v231_v54, %v230_v53 }
 0x1ad   :  { %v233_v56 = vrot.slane %v232_v55, 1 }
 0x1af   :  { %v234_v57 = vadd.f32 %v233_v56, %v232_v55 }
 0x1b1   :  { %235 = vst [vmem:[#allocation5] sm:$0xff] %v234_v57 }
 0x1b2   :  { %246 = dma.vmem_to_hbm [thread:$0]  %s242_s28, 128, %s244_s30, [#allocation4]  }
 0x1b3   :  { %313 = dma.done.wait [#allocation4], 128  }
 0x1b4   :  { %314 = vsyncadd [#allocation4], 4294967168 }
 0x1b5   :  { %251 = vsyncpa [#allocation3], 1 }
 0x1b6   :  { %252 = vsyncpa [#allocation4], 1 }

</bundles_post_ra>
